<compile_context>
chip_gen: v6e
topology: v6e:2x2x1
jax: 0.10.0
libtpu: 0.0.40
codegen_flags: <defaults>
</compile_context>

<pallas_src>
import functools

import jax
import jax.numpy as jnp
from jax.experimental import pallas as pl
from jax.experimental.pallas import tpu as pltpu  # noqa: F401  (TPU backend import parity)

LANE = 128
SUBLANE = 8
# At/below this contraction size the VPU broadcast-FMA path wins; above it the
# MXU one-push contraction is cheaper (XLU broadcast slots saturate first).
VPU_K_MAX = 8


def fused_affine_kernel(x_ref, p_ref, o_ref):
    """o = x @ Wf + bf  for the activation-free 3-layer stack.

    x_ref : (B, in_f)          input rows
    p_ref : (rows_pad, 128)    packed params; rows [0, in_f) = Wf, row in_f = bf
    o_ref : (B, out_f)         output (masked store on the last out_f lanes)
    """
    B, in_f = x_ref.shape
    out_f = o_ref.shape[1]
    x = x_ref[...]                                                # (B, in_f)

    if in_f <= VPU_K_MAX:
        # Degenerate K: bias row broadcast over batch + K VPU broadcast-FMAs.
        acc = jnp.broadcast_to(p_ref[in_f:in_f + 1, :], (B, LANE))  # (B, 128)
        for k in range(in_f):                                       # static unroll
            acc = acc + x[:, k:k + 1] * p_ref[k:k + 1, :]
    else:
        # MXU fallback for larger contraction dims.
        acc = jnp.dot(x, p_ref[:in_f, :], preferred_element_type=jnp.float32)
        acc = acc + p_ref[in_f:in_f + 1, :]

    # Single masked store of the logical output width (no post-kernel slice).
    o_ref[...] = acc[:, :out_f].astype(o_ref.dtype)


def fuse_and_pack_params(params):
    """ONE-TIME setup: collapse the activation-free 3-layer MLP into a single
    affine map and pack it into one lane-padded f32 slab.

    Returns (packed[(rows_pad, 128)], in_features, out_features).
    Rows [0, in_f) hold W_fused, row in_f holds the fused bias.
    """
    w1, b1, w2, b2, w3, b3 = (params["w1"], params["b1"], params["w2"],
                              params["b2"], params["w3"], params["b3"])
    w_fused = w1 @ w2 @ w3                       # (in_f, out_f)
    b_fused = (b1 @ w2 + b2) @ w3 + b3           # (1, out_f)

    in_f, out_f = w_fused.shape
    assert out_f <= LANE, f"output_features={out_f} must be <= {LANE}"

    rows = in_f + 1
    rows_pad = ((rows + SUBLANE - 1) // SUBLANE) * SUBLANE
    packed = jnp.zeros((rows_pad, LANE), jnp.float32)
    packed = packed.at[:in_f, :out_f].set(w_fused)
    packed = packed.at[in_f, :out_f].set(b_fused[0])
    return packed, in_f, out_f


@functools.partial(jax.jit, static_argnames=("out_features",))
def blob_model_forward(x, packed, *, out_features):
    """Hot-path forward: x (B, in_f) f32, packed = pre-fused param slab."""
    B, in_f = x.shape

    cost = pl.CostEstimate(
        flops=2 * B * in_f * LANE + B * LANE,
        transcendentals=0,
        bytes_accessed=x.size * 4 + packed.size * 4 + B * out_features * 4,
    )

    return pl.pallas_call(
        fused_affine_kernel,
        out_shape=jax.ShapeDtypeStruct((B, out_features), x.dtype),
        grid=(),
        in_specs=[
            pl.BlockSpec(x.shape, lambda: (0, 0)),
            pl.BlockSpec(packed.shape, lambda: (0, 0)),
        ],
        out_specs=pl.BlockSpec((B, out_features), lambda: (0, 0)),
        cost_estimate=cost,
    )(x, packed)


def init_params(key, input_features, output_features, hidden_units=8):
    """Deterministic init mimicking nn.Linear (uniform +-1/sqrt(fan_in)).
    Weights stored as (in, out) = transpose of PyTorch's (out, in)."""
    ks = jax.random.split(key, 6)

    def linear(kw, kb, fan_in, fan_out):
        bound = 1.0 / jnp.sqrt(jnp.float32(fan_in))
        w = jax.random.uniform(kw, (fan_in, fan_out), jnp.float32, -bound, bound)
        b = jax.random.uniform(kb, (1, fan_out), jnp.float32, -bound, bound)
        return w, b

    w1, b1 = linear(ks[0], ks[1], input_features, hidden_units)
    w2, b2 = linear(ks[2], ks[3], hidden_units, hidden_units)
    w3, b3 = linear(ks[4], ks[5], hidden_units, output_features)
    return {"w1": w1, "b1": b1, "w2": w2, "b2": b2, "w3": w3, "b3": b3}


if __name__ == "__main__":
    key = jax.random.PRNGKey(0)
    k_x, k_p = jax.random.split(key)

    input_features, output_features, hidden_units = 2, 4, 8
    batch = 32

    x = jax.random.normal(k_x, (batch, input_features), jnp.float32)
    params = init_params(k_p, input_features, output_features, hidden_units)

    # One-time parameter fusion + packing (hoisted out of the hot path).
    packed, in_f, out_f = fuse_and_pack_params(params)
    packed = jax.block_until_ready(packed)

    out = blob_model_forward(x, packed, out_features=out_f)
    out = jax.block_until_ready(out)

    # Pure-JAX reference: original (unfused) sequential 3-layer forward.
    ref = x
    for wname, bname in (("w1", "b1"), ("w2", "b2"), ("w3", "b3")):
        ref = ref @ params[wname] + params[bname]

    assert out.shape == (batch, output_features)
    assert jnp.allclose(out, ref, atol=1e-5, rtol=1e-5)

    print("KERNEL_OK")
</pallas_src>

<mosaic_0001>
module attributes {stable_mosaic.version = 11 : i64} {
  func.func @fused_affine_kernel(%arg0: memref<32x2xf32, #tpu.memory_space<vmem>>, %arg1: memref<8x128xf32, #tpu.memory_space<vmem>>, %arg2: memref<32x4xf32, #tpu.memory_space<vmem>>) attributes {dimension_semantics = [], scalar_prefetch = 0 : i64, scratch_operands = 0 : i64, tpu.core_type = #tpu.core_type<tc>} {
    %c0 = arith.constant 0 : index
    %c0_0 = arith.constant 0 : index
    %0 = vector.load %arg0[%c0, %c0_0] : memref<32x2xf32, #tpu.memory_space<vmem>>, vector<32x2xf32>
    %c2 = arith.constant 2 : index
    %c0_1 = arith.constant 0 : index
    %1 = vector.load %arg1[%c2, %c0_1] : memref<8x128xf32, #tpu.memory_space<vmem>>, vector<1x128xf32>
    %2 = vector.shape_cast %1 : vector<1x128xf32> to vector<1x128xf32>
    %3 = vector.broadcast %2 : vector<1x128xf32> to vector<32x128xf32>
    %4 = vector.extract_strided_slice %0 {offsets = [0, 0], sizes = [32, 1], strides = [1, 1]} : vector<32x2xf32> to vector<32x1xf32>
    %c0_2 = arith.constant 0 : index
    %c0_3 = arith.constant 0 : index
    %5 = vector.load %arg1[%c0_2, %c0_3] : memref<8x128xf32, #tpu.memory_space<vmem>>, vector<1x128xf32>
    %6 = vector.broadcast %4 : vector<32x1xf32> to vector<32x128xf32>
    %7 = vector.broadcast %5 : vector<1x128xf32> to vector<32x128xf32>
    %8 = arith.mulf %6, %7 : vector<32x128xf32>
    %9 = arith.addf %3, %8 : vector<32x128xf32>
    %10 = vector.extract_strided_slice %0 {offsets = [0, 1], sizes = [32, 1], strides = [1, 1]} : vector<32x2xf32> to vector<32x1xf32>
    %c1 = arith.constant 1 : index
    %c0_4 = arith.constant 0 : index
    %11 = vector.load %arg1[%c1, %c0_4] : memref<8x128xf32, #tpu.memory_space<vmem>>, vector<1x128xf32>
    %12 = vector.broadcast %10 : vector<32x1xf32> to vector<32x128xf32>
    %13 = vector.broadcast %11 : vector<1x128xf32> to vector<32x128xf32>
    %14 = arith.mulf %12, %13 : vector<32x128xf32>
    %15 = arith.addf %9, %14 : vector<32x128xf32>
    %16 = vector.extract_strided_slice %15 {offsets = [0, 0], sizes = [32, 4], strides = [1, 1]} : vector<32x128xf32> to vector<32x4xf32>
    %c0_5 = arith.constant 0 : index
    %c0_6 = arith.constant 0 : index
    %17 = vector.load %arg2[%c0_5, %c0_6] : memref<32x4xf32, #tpu.memory_space<vmem>>, vector<32x4xf32>
    tpu.vector_store %arg2[%c0_5, %c0_6], %16 {strides = array<i32>} : memref<32x4xf32, #tpu.memory_space<vmem>>, vector<32x4xf32>,
    return
  }
}

</mosaic_0001>

<bundles_post_ra>
// kernel: blob_model_forward.1
= control target key start
LH: loop header
LB: loop body
LE: loop exit
PB: predicated region body
PF: predicated region fallthrough
CT: control target
= control target key end

     0   :  { %v100_v0 = vmov 0   ;;  %v101_v5 = vmov 1   ;;  %vm82_vm0 = vcmask 31744   ;;  %s150_s0 = inlined_call_operand.vmem [shape: f32[32,2], index: 0, kind: input, shape index: {}]   ;;  %s151_s1 = inlined_call_operand.vmem [shape: f32[8,128], index: 1, kind: input, shape index: {}]   ;;  %s152_s2 = inlined_call_operand.vmem [shape: f32[32,4], index: 2, kind: output, shape index: {}]  }
   0x1   :  { %97 = vset.pattern.permute.xlu1 %v100_v0  ;;  %96 = vset.pattern.permute.xlu0 %v100_v0  ;;  %v13_v1 = vld [vmem:[%s150_s0 + $0x10] sm:$0xff]  ;;  %v11_v2 = vld [vmem:[%s150_s0] sm:$0xff]  ;;  %v14_v3 = vld [vmem:[%s150_s0 + $0x18] sm:$0xff] }
   0x2   :  { %33 = vperm.xlu1 %97, %v13_v1   ;;  %23 = vperm.xlu0 %96, %v11_v2   ;;  %v12_v4 = vld [vmem:[%s150_s0 + $0x8] sm:$0xff]  ;;  %v92_v8 = vld [vmem:[%s151_s1] ss:$0 sm:$0xff]  ;;  %v91_v12 = vld [vmem:[%s151_s1 + $0x2] ss:$0 sm:$0xff] }
   0x3   :  { %v93_v14 = vld [vmem:[%s151_s1 + $0x1] ss:$0 sm:$0xff] }
   0x6   :  { %38 = vperm.xlu1 %97, %v14_v3   ;;  %28 = vperm.xlu0 %96, %v12_v4  }
   0xa   :  { %99 = vset.pattern.permute.xlu1 %v101_v5  ;;  %98 = vset.pattern.permute.xlu0 %v101_v5 }
   0xb   :  { %59 = vperm.xlu1 %99, %v12_v4   ;;  %55 = vperm.xlu0 %98, %v11_v2  }
   0xf   :  { %63 = vperm.xlu1 %99, %v13_v1   ;;  %67 = vperm.xlu0 %98, %v14_v3  }
  0x7d   :  { %v34_v6 = vpop.permute.xlu1 %33  ;;  %v24_v7 = vpop.permute.xlu0 %23 }
  0x7e   :  { %v45_v11 = vmul.f32 %v92_v8, %v24_v7  ;;  %v47_v15 = vmul.f32 %v92_v8, %v34_v6 }
  0x80   :  { %v49_v16 = vadd.f32 %v91_v12, %v45_v11  ;;  %v51_v27 = vadd.f32 %v91_v12, %v47_v15 }
  0x81   :  { %v39_v9 = vpop.permute.xlu1 %38  ;;  %v29_v10 = vpop.permute.xlu0 %28 }
  0x82   :  { %v46_v13 = vmul.f32 %v92_v8, %v29_v10  ;;  %v48_v19 = vmul.f32 %v92_v8, %v39_v9 }
  0x84   :  { %v50_v20 = vadd.f32 %v91_v12, %v46_v13  ;;  %v52_v28 = vadd.f32 %v91_v12, %v48_v19 }
  0x86   :  { %v60_v17 = vpop.permute.xlu1 %59  ;;  %v56_v18 = vpop.permute.xlu0 %55 }
  0x87   :  { %v75_v21 = vmul.f32 %v93_v14, %v60_v17  ;;  %v74_v22 = vmul.f32 %v93_v14, %v56_v18 }
  0x89   :  { %v79_v23 = vadd.f32 %v75_v21, %v50_v20  ;;  %v78_v24 = vadd.f32 %v74_v22, %v49_v16 }
  0x8a   :  { %v64_v25 = vpop.permute.xlu1 %63  ;;  %v68_v26 = vpop.permute.xlu0 %67 }
  0x8b   :  { %84 = vst.msk [vmem:[%s152_s2 + $0x8] sm:$0xff] %vm82_vm0, %v79_v23  ;;  %83 = vst.msk [vmem:[%s152_s2] sm:$0xff] %vm82_vm0, %v78_v24  ;;  %v76_v29 = vmul.f32 %v93_v14, %v64_v25  ;;  %v77_v30 = vmul.f32 %v93_v14, %v68_v26 }
  0x8d   :  { %v80_v31 = vadd.f32 %v76_v29, %v51_v27  ;;  %v81_v32 = vadd.f32 %v77_v30, %v52_v28 }
  0x8f   :  { %85 = vst.msk [vmem:[%s152_s2 + $0x10] sm:$0xff] %vm82_vm0, %v80_v31  ;;  %86 = vst.msk [vmem:[%s152_s2 + $0x18] sm:$0xff] %vm82_vm0, %v81_v32 }

</bundles_post_ra>
